<compile_context>
chip_gen: v5e
topology: v5e:2x2
jax: 0.10.0
libtpu: 0.0.40
codegen_flags: <defaults>
</compile_context>

<pallas_src>
import functools
from typing import NamedTuple, Tuple

import jax
import jax.numpy as jnp
from jax.experimental import pallas as pl
from jax.experimental.pallas import tpu as pltpu


def _round_up(x, m):
    return (x + m - 1) // m * m


class PreparedParams(NamedTuple):
    """Pre-cast / pre-padded parameters. Build ONCE with prepare_params()."""
    layers: Tuple[Tuple[jax.Array, jax.Array], ...]   # (W_t, b); W_t is (in, out)
    out_size: int
    out_pad: int


def prepare_params(params, weight_dtype=jnp.bfloat16):
    """One-time parameter preparation (hoisted out of the per-forward hot path).

    * casts every weight (already transposed to (in, out)) to `weight_dtype`,
    * reshapes biases to (1, out) in f32,
    * zero-pads the LAST layer's weight/bias columns to a multiple of 128 so the
      kernel's output stores are full-width (lane-dense, unmasked).
    """
    out_size = int(params[-1][0].shape[1])
    out_pad = _round_up(out_size, 128)

    layers = []
    for (w, b) in params[:-1]:
        layers.append((jnp.asarray(w, weight_dtype),
                       jnp.asarray(b, jnp.float32).reshape(1, -1)))

    w_out, b_out = params[-1]
    w_out_p = jnp.zeros((w_out.shape[0], out_pad), weight_dtype)
    w_out_p = w_out_p.at[:, :out_size].set(jnp.asarray(w_out, weight_dtype))
    b_out_p = jnp.zeros((1, out_pad), jnp.float32)
    b_out_p = b_out_p.at[:, :out_size].set(
        jnp.asarray(b_out, jnp.float32).reshape(1, -1))
    layers.append((w_out_p, b_out_p))

    return PreparedParams(layers=tuple(layers), out_size=out_size, out_pad=out_pad)


def _dense_kernel(num_hidden, x_ref, *refs):
    """refs = (w0, b0, w1, b1, ..., w_out, b_out, y_ref); all VMEM tiles.

    Weights are (in, out) (pre-transposed vs. nn.Linear.weight), so every layer
    is one row-major (rows, K) @ (K, N) MXU matmul with f32 accumulation.
    Bias-add + ReLU stay in f32 (VPU); only the MXU inputs are bf16.
    """
    y_ref = refs[-1]
    wb = refs[:-1]

    a = x_ref[...]                                          # (TM, in_size) f32
    for i in range(num_hidden):
        w = wb[2 * i][...]                                  # (K, N)   bf16
        b = wb[2 * i + 1][...]                              # (1, N)   f32
        acc = jnp.dot(a.astype(w.dtype), w, preferred_element_type=jnp.float32)
        a = jnp.maximum(acc + b, 0.0)                       # Linear -> ReLU
    w = wb[-2][...]                                         # (K, out_pad)
    b = wb[-1][...]                                         # (1, out_pad)
    acc = jnp.dot(a.astype(w.dtype), w, preferred_element_type=jnp.float32)
    y_ref[...] = (acc + b).astype(y_ref.dtype)              # output layer (no act)


def _make_call(layers, num_hidden, tm, grid_m, in_size, n_rows, out_pad,
               single_buffer_weights):
    wkw = {}
    if single_buffer_weights and hasattr(pl, "Buffered"):
        # Constant-index blocks don't need double-buffering; halves weight VMEM.
        wkw = dict(pipeline_mode=pl.Buffered(1))

    in_specs = [pl.BlockSpec((tm, in_size), lambda i: (i, 0))]   # x row tile
    for (w, b) in layers:
        in_specs.append(pl.BlockSpec(w.shape, lambda i: (0, 0), **wkw))
        in_specs.append(pl.BlockSpec(b.shape, lambda i: (0, 0), **wkw))
    out_spec = pl.BlockSpec((tm, out_pad), lambda i: (i, 0))

    # Explicit scoped-VMEM budget: resident weights/biases + activations +
    # pipelined x/y tiles, with ~50% headroom (defaults: 16 MiB v5e / 32 MiB v6e,v7x).
    wbuf = 1 if wkw else 2
    widths = [in_size] + [int(w.shape[1]) for (w, _) in layers]
    vmem = 2 * tm * in_size * 4 + 2 * tm * out_pad * 4
    vmem += sum(wbuf * (int(w.size) * w.dtype.itemsize + int(b.size) * 4)
                for (w, b) in layers)
    vmem += tm * max(widths) * 4 * 3            # f32 activations + bf16 copies
    vmem_limit = int(min(128 * 1024 * 1024,
                         max(32 * 1024 * 1024, (vmem * 3) // 2)))

    return pl.pallas_call(
        functools.partial(_dense_kernel, num_hidden),
        grid_spec=pltpu.PrefetchScalarGridSpec(
            num_scalar_prefetch=0,
            grid=(grid_m,),
            in_specs=in_specs,
            out_specs=out_spec,
        ),
        out_shape=jax.ShapeDtypeStruct((n_rows, out_pad), jnp.float32),
        compiler_params=pltpu.CompilerParams(
            dimension_semantics=("parallel",),
            vmem_limit_bytes=vmem_limit,
        ),
    )


def densenet_forward(x, prepared, *, row_tile=512):
    """Forward pass of DenseNet (Linear->ReLU hidden layers, Linear output).

    x:        (..., input_size) array.
    prepared: PreparedParams from prepare_params() (one-time prep, NOT per call).
    Returns (..., output_size), matching DenseNet.forward.
    """
    orig_shape = x.shape
    in_size = orig_shape[-1]
    x2 = x.reshape(-1, in_size).astype(jnp.float32)
    n_rows = x2.shape[0]

    layers = prepared.layers
    num_hidden = len(layers) - 1
    out_size, out_pad = prepared.out_size, prepared.out_pad

    # ---- row tiling (no padded copy of x; ragged edge blocks are masked and
    #      the corresponding garbage rows never survive the final slice) ------
    row_tile = _round_up(max(row_tile, 8), 8)
    if n_rows <= 256:
        tm = n_rows                               # single tile == full row extent
    elif n_rows <= row_tile:
        # >= 2 row tiles so the "parallel" axis can shard across v7x's 2 TCs.
        tm = _round_up(pl.cdiv(n_rows, 2), 8)
    else:
        tm = row_tile
    grid_m = pl.cdiv(n_rows, tm)

    flat_wb = []
    for (w, b) in layers:
        flat_wb += [w, b]

    try:
        y_p = _make_call(layers, num_hidden, tm, grid_m, in_size, n_rows,
                         out_pad, single_buffer_weights=True)(x2, *flat_wb)
    except Exception:
        # pl.Buffered(1) not supported by this jax build -> default buffering.
        y_p = _make_call(layers, num_hidden, tm, grid_m, in_size, n_rows,
                         out_pad, single_buffer_weights=False)(x2, *flat_wb)

    y = y_p[:, :out_size]
    return y.reshape(orig_shape[:-1] + (out_size,))


def reference_forward(x, params):
    """Pure-JAX reference matching DenseNet.forward (ReLU hidden, linear out)."""
    a = x.reshape(-1, x.shape[-1]).astype(jnp.float32)
    for (w, b) in params[:-1]:
        a = jnp.maximum(a @ w + b.reshape(1, -1), 0.0)
    w, b = params[-1]
    y = a @ w + b.reshape(1, -1)
    return y.reshape(x.shape[:-1] + (w.shape[1],))


def make_dense_params(key, input_size, hidden_layer, output_size):
    dims = [input_size] + list(hidden_layer) + [output_size]
    params = []
    s = 0.1
    for i in range(len(dims) - 1):
        key, kw, kb = jax.random.split(key, 3)
        w_t = s * jax.random.normal(kw, (dims[i], dims[i + 1]), jnp.float32)
        b = s * jax.random.normal(kb, (dims[i + 1],), jnp.float32)
        params.append((w_t, b))
    return params


if __name__ == "__main__":
    # DenseNet defaults: hidden_layer=[64, 64], hidden_activate=ReLU,
    # output_activate=None, BatchNorm=False.  Small shapes: batch=32, in=16, out=4.
    BATCH, IN, OUT = 32, 16, 4
    HIDDEN = [64, 64]

    key = jax.random.PRNGKey(0)
    kx, kp = jax.random.split(key)
    x = jax.random.normal(kx, (BATCH, IN), jnp.float32)
    params = make_dense_params(kp, IN, HIDDEN, OUT)

    prepared = prepare_params(params)          # one-time prep (bf16, padded)
    y = densenet_forward(x, prepared)
    jax.block_until_ready(y)

    y_ref = reference_forward(x, params)
    assert y.shape == (BATCH, OUT)
    # bf16 weights at the MXU inputs (f32 accumulation) -> slightly looser tol.
    assert jnp.allclose(y, y_ref, atol=2e-2, rtol=2e-2), float(
        jnp.max(jnp.abs(y - y_ref)))

    print("KERNEL_OK")
</pallas_src>

<mosaic_0001>
module attributes {stable_mosaic.version = 11 : i64} {
  func.func @_dense_kernel(%arg0: i32, %arg1: memref<32x16xf32, #tpu.memory_space<vmem>>, %arg2: memref<16x64xbf16, #tpu.memory_space<vmem>>, %arg3: memref<1x64xf32, #tpu.memory_space<vmem>>, %arg4: memref<64x64xbf16, #tpu.memory_space<vmem>>, %arg5: memref<1x64xf32, #tpu.memory_space<vmem>>, %arg6: memref<64x128xbf16, #tpu.memory_space<vmem>>, %arg7: memref<1x128xf32, #tpu.memory_space<vmem>>, %arg8: memref<32x128xf32, #tpu.memory_space<vmem>>) attributes {dimension_semantics = [#tpu.dimension_semantics<parallel>], iteration_bounds = array<i64: 1>, scalar_prefetch = 0 : i64, scratch_operands = 0 : i64, tpu.core_type = #tpu.core_type<tc>, window_params = [{transform_indices = @transform_0, window_bounds = array<i64: 32, 16>}, {pipeline_mode = #tpu.pipeline_mode<synchronous>, transform_indices = @transform_1, window_bounds = array<i64: 16, 64>}, {pipeline_mode = #tpu.pipeline_mode<synchronous>, transform_indices = @transform_2, window_bounds = array<i64: 1, 64>}, {pipeline_mode = #tpu.pipeline_mode<synchronous>, transform_indices = @transform_3, window_bounds = array<i64: 64, 64>}, {pipeline_mode = #tpu.pipeline_mode<synchronous>, transform_indices = @transform_4, window_bounds = array<i64: 1, 64>}, {pipeline_mode = #tpu.pipeline_mode<synchronous>, transform_indices = @transform_5, window_bounds = array<i64: 64, 128>}, {pipeline_mode = #tpu.pipeline_mode<synchronous>, transform_indices = @transform_6, window_bounds = array<i64: 1, 128>}, {transform_indices = @transform_7, window_bounds = array<i64: 32, 128>}]} {
    %c0 = arith.constant 0 : index
    %c0_0 = arith.constant 0 : index
    %0 = vector.load %arg1[%c0, %c0_0] : memref<32x16xf32, #tpu.memory_space<vmem>>, vector<32x16xf32>
    %c0_1 = arith.constant 0 : index
    %c0_2 = arith.constant 0 : index
    %1 = vector.load %arg2[%c0_1, %c0_2] : memref<16x64xbf16, #tpu.memory_space<vmem>>, vector<16x64xbf16>
    %c0_3 = arith.constant 0 : index
    %c0_4 = arith.constant 0 : index
    %2 = vector.load %arg3[%c0_3, %c0_4] : memref<1x64xf32, #tpu.memory_space<vmem>>, vector<1x64xf32>
    %3 = arith.truncf %0 : vector<32x16xf32> to vector<32x16xbf16>
    %cst = arith.constant dense<0.000000e+00> : vector<32x64xf32>
    %4 = tpu.matmul %3, %1, %cst {dimension_numbers = #tpu.dot_dimension_numbers<[1], [0], [0], [1], [0, 0, 1, 1], [], []>} : vector<32x16xbf16>, vector<16x64xbf16>, vector<32x64xf32> -> vector<32x64xf32>
    %5 = vector.broadcast %2 : vector<1x64xf32> to vector<32x64xf32>
    %6 = arith.addf %4, %5 : vector<32x64xf32>
    %cst_5 = arith.constant 0.000000e+00 : f32
    %7 = vector.broadcast %cst_5 : f32 to vector<32x64xf32>
    %8 = arith.maximumf %6, %7 : vector<32x64xf32>
    %c0_6 = arith.constant 0 : index
    %c0_7 = arith.constant 0 : index
    %9 = vector.load %arg4[%c0_6, %c0_7] : memref<64x64xbf16, #tpu.memory_space<vmem>>, vector<64x64xbf16>
    %c0_8 = arith.constant 0 : index
    %c0_9 = arith.constant 0 : index
    %10 = vector.load %arg5[%c0_8, %c0_9] : memref<1x64xf32, #tpu.memory_space<vmem>>, vector<1x64xf32>
    %11 = arith.truncf %8 : vector<32x64xf32> to vector<32x64xbf16>
    %cst_10 = arith.constant dense<0.000000e+00> : vector<32x64xf32>
    %12 = tpu.matmul %11, %9, %cst_10 {dimension_numbers = #tpu.dot_dimension_numbers<[1], [0], [0], [1], [0, 0, 1, 1], [], []>} : vector<32x64xbf16>, vector<64x64xbf16>, vector<32x64xf32> -> vector<32x64xf32>
    %13 = vector.broadcast %10 : vector<1x64xf32> to vector<32x64xf32>
    %14 = arith.addf %12, %13 : vector<32x64xf32>
    %cst_11 = arith.constant 0.000000e+00 : f32
    %15 = vector.broadcast %cst_11 : f32 to vector<32x64xf32>
    %16 = arith.maximumf %14, %15 : vector<32x64xf32>
    %c0_12 = arith.constant 0 : index
    %c0_13 = arith.constant 0 : index
    %17 = vector.load %arg6[%c0_12, %c0_13] : memref<64x128xbf16, #tpu.memory_space<vmem>>, vector<64x128xbf16>
    %c0_14 = arith.constant 0 : index
    %c0_15 = arith.constant 0 : index
    %18 = vector.load %arg7[%c0_14, %c0_15] : memref<1x128xf32, #tpu.memory_space<vmem>>, vector<1x128xf32>
    %19 = arith.truncf %16 : vector<32x64xf32> to vector<32x64xbf16>
    %cst_16 = arith.constant dense<0.000000e+00> : vector<32x128xf32>
    %20 = tpu.matmul %19, %17, %cst_16 {dimension_numbers = #tpu.dot_dimension_numbers<[1], [0], [0], [1], [0, 0, 1, 1], [], []>} : vector<32x64xbf16>, vector<64x128xbf16>, vector<32x128xf32> -> vector<32x128xf32>
    %21 = vector.broadcast %18 : vector<1x128xf32> to vector<32x128xf32>
    %22 = arith.addf %20, %21 : vector<32x128xf32>
    %c0_17 = arith.constant 0 : index
    %c0_18 = arith.constant 0 : index
    %23 = vector.load %arg8[%c0_17, %c0_18] : memref<32x128xf32, #tpu.memory_space<vmem>>, vector<32x128xf32>
    tpu.vector_store %arg8[%c0_17, %c0_18], %22 {strides = array<i32>} : memref<32x128xf32, #tpu.memory_space<vmem>>, vector<32x128xf32>,
    return
  }
  func.func @transform_0(%arg0: i32) -> (i32, i32) {
    %c0_i32 = arith.constant 0 : i32
    %c0_i32_0 = arith.constant 0 : i32
    return %arg0, %c0_i32 : i32, i32
  }
  func.func @transform_1(%arg0: i32) -> (i32, i32) {
    %c0_i32 = arith.constant 0 : i32
    %c0_i32_0 = arith.constant 0 : i32
    %c0_i32_1 = arith.constant 0 : i32
    return %c0_i32, %c0_i32_0 : i32, i32
  }
  func.func @transform_2(%arg0: i32) -> (i32, i32) {
    %c0_i32 = arith.constant 0 : i32
    %c0_i32_0 = arith.constant 0 : i32
    %c0_i32_1 = arith.constant 0 : i32
    return %c0_i32, %c0_i32_0 : i32, i32
  }
  func.func @transform_3(%arg0: i32) -> (i32, i32) {
    %c0_i32 = arith.constant 0 : i32
    %c0_i32_0 = arith.constant 0 : i32
    %c0_i32_1 = arith.constant 0 : i32
    return %c0_i32, %c0_i32_0 : i32, i32
  }
  func.func @transform_4(%arg0: i32) -> (i32, i32) {
    %c0_i32 = arith.constant 0 : i32
    %c0_i32_0 = arith.constant 0 : i32
    %c0_i32_1 = arith.constant 0 : i32
    return %c0_i32, %c0_i32_0 : i32, i32
  }
  func.func @transform_5(%arg0: i32) -> (i32, i32) {
    %c0_i32 = arith.constant 0 : i32
    %c0_i32_0 = arith.constant 0 : i32
    %c0_i32_1 = arith.constant 0 : i32
    return %c0_i32, %c0_i32_0 : i32, i32
  }
  func.func @transform_6(%arg0: i32) -> (i32, i32) {
    %c0_i32 = arith.constant 0 : i32
    %c0_i32_0 = arith.constant 0 : i32
    %c0_i32_1 = arith.constant 0 : i32
    return %c0_i32, %c0_i32_0 : i32, i32
  }
  func.func @transform_7(%arg0: i32) -> (i32, i32) {
    %c0_i32 = arith.constant 0 : i32
    %c0_i32_0 = arith.constant 0 : i32
    return %arg0, %c0_i32 : i32, i32
  }
}

module attributes {stable_mosaic.version = 11 : i64} {
  func.func @_dense_kernel(%arg0: i32, %arg1: memref<32x16xf32, #tpu.memory_space<vmem>>, %arg2: memref<16x64xbf16, #tpu.memory_space<vmem>>, %arg3: memref<1x64xf32, #tpu.memory_space<vmem>>, %arg4: memref<64x64xbf16, #tpu.memory_space<vmem>>, %arg5: memref<1x64xf32, #tpu.memory_space<vmem>>, %arg6: memref<64x128xbf16, #tpu.memory_space<vmem>>, %arg7: memref<1x128xf32, #tpu.memory_space<vmem>>, %arg8: memref<32x128xf32, #tpu.memory_space<vmem>>) attributes {dimension_semantics = [#tpu.dimension_semantics<parallel>], iteration_bounds = array<i64: 1>, scalar_prefetch = 0 : i64, scratch_operands = 0 : i64, tpu.core_type = #tpu.core_type<tc>, window_params = [{transform_indices = @transform_0, window_bounds = array<i64: 32, 16>}, {pipeline_mode = #tpu.pipeline_mode<synchronous>, transform_indices = @transform_1, window_bounds = array<i64: 16, 64>}, {pipeline_mode = #tpu.pipeline_mode<synchronous>, transform_indices = @transform_2, window_bounds = array<i64: 1, 64>}, {pipeline_mode = #tpu.pipeline_mode<synchronous>, transform_indices = @transform_3, window_bounds = array<i64: 64, 64>}, {pipeline_mode = #tpu.pipeline_mode<synchronous>, transform_indices = @transform_4, window_bounds = array<i64: 1, 64>}, {pipeline_mode = #tpu.pipeline_mode<synchronous>, transform_indices = @transform_5, window_bounds = array<i64: 64, 128>}, {pipeline_mode = #tpu.pipeline_mode<synchronous>, transform_indices = @transform_6, window_bounds = array<i64: 1, 128>}, {transform_indices = @transform_7, window_bounds = array<i64: 32, 128>}]} {
    %c0 = arith.constant 0 : index
    %c0_0 = arith.constant 0 : index
    %0 = vector.load %arg1[%c0, %c0_0] : memref<32x16xf32, #tpu.memory_space<vmem>>, vector<32x16xf32>
    %c0_1 = arith.constant 0 : index
    %c0_2 = arith.constant 0 : index
    %1 = vector.load %arg2[%c0_1, %c0_2] : memref<16x64xbf16, #tpu.memory_space<vmem>>, vector<16x64xbf16>
    %c0_3 = arith.constant 0 : index
    %c0_4 = arith.constant 0 : index
    %2 = vector.load %arg3[%c0_3, %c0_4] : memref<1x64xf32, #tpu.memory_space<vmem>>, vector<1x64xf32>
    %3 = arith.truncf %0 : vector<32x16xf32> to vector<32x16xbf16>
    %cst = arith.constant dense<0.000000e+00> : vector<32x64xf32>
    %4 = tpu.matmul %3, %1, %cst {dimension_numbers = #tpu.dot_dimension_numbers<[1], [0], [0], [1], [0, 0, 1, 1], [], []>} : vector<32x16xbf16>, vector<16x64xbf16>, vector<32x64xf32> -> vector<32x64xf32>
    %5 = vector.broadcast %2 : vector<1x64xf32> to vector<32x64xf32>
    %6 = arith.addf %4, %5 : vector<32x64xf32>
    %cst_5 = arith.constant 0.000000e+00 : f32
    %7 = vector.broadcast %cst_5 : f32 to vector<32x64xf32>
    %8 = arith.maximumf %6, %7 : vector<32x64xf32>
    %c0_6 = arith.constant 0 : index
    %c0_7 = arith.constant 0 : index
    %9 = vector.load %arg4[%c0_6, %c0_7] : memref<64x64xbf16, #tpu.memory_space<vmem>>, vector<64x64xbf16>
    %c0_8 = arith.constant 0 : index
    %c0_9 = arith.constant 0 : index
    %10 = vector.load %arg5[%c0_8, %c0_9] : memref<1x64xf32, #tpu.memory_space<vmem>>, vector<1x64xf32>
    %11 = arith.truncf %8 : vector<32x64xf32> to vector<32x64xbf16>
    %cst_10 = arith.constant dense<0.000000e+00> : vector<32x64xf32>
    %12 = tpu.matmul %11, %9, %cst_10 {dimension_numbers = #tpu.dot_dimension_numbers<[1], [0], [0], [1], [0, 0, 1, 1], [], []>} : vector<32x64xbf16>, vector<64x64xbf16>, vector<32x64xf32> -> vector<32x64xf32>
    %13 = vector.broadcast %10 : vector<1x64xf32> to vector<32x64xf32>
    %14 = arith.addf %12, %13 : vector<32x64xf32>
    %cst_11 = arith.constant 0.000000e+00 : f32
    %15 = vector.broadcast %cst_11 : f32 to vector<32x64xf32>
    %16 = arith.maximumf %14, %15 : vector<32x64xf32>
    %c0_12 = arith.constant 0 : index
    %c0_13 = arith.constant 0 : index
    %17 = vector.load %arg6[%c0_12, %c0_13] : memref<64x128xbf16, #tpu.memory_space<vmem>>, vector<64x128xbf16>
    %c0_14 = arith.constant 0 : index
    %c0_15 = arith.constant 0 : index
    %18 = vector.load %arg7[%c0_14, %c0_15] : memref<1x128xf32, #tpu.memory_space<vmem>>, vector<1x128xf32>
    %19 = arith.truncf %16 : vector<32x64xf32> to vector<32x64xbf16>
    %cst_16 = arith.constant dense<0.000000e+00> : vector<32x128xf32>
    %20 = tpu.matmul %19, %17, %cst_16 {dimension_numbers = #tpu.dot_dimension_numbers<[1], [0], [0], [1], [0, 0, 1, 1], [], []>} : vector<32x64xbf16>, vector<64x128xbf16>, vector<32x128xf32> -> vector<32x128xf32>
    %21 = vector.broadcast %18 : vector<1x128xf32> to vector<32x128xf32>
    %22 = arith.addf %20, %21 : vector<32x128xf32>
    %c0_17 = arith.constant 0 : index
    %c0_18 = arith.constant 0 : index
    %23 = vector.load %arg8[%c0_17, %c0_18] : memref<32x128xf32, #tpu.memory_space<vmem>>, vector<32x128xf32>
    tpu.vector_store %arg8[%c0_17, %c0_18], %22 {strides = array<i32>} : memref<32x128xf32, #tpu.memory_space<vmem>>, vector<32x128xf32>,
    return
  }
  func.func @transform_0(%arg0: i32) -> (i32, i32) {
    %c0_i32 = arith.constant 0 : i32
    %c0_i32_0 = arith.constant 0 : i32
    return %arg0, %c0_i32 : i32, i32
  }
  func.func @transform_1(%arg0: i32) -> (i32, i32) {
    %c0_i32 = arith.constant 0 : i32
    %c0_i32_0 = arith.constant 0 : i32
    %c0_i32_1 = arith.constant 0 : i32
    return %c0_i32, %c0_i32_0 : i32, i32
  }
  func.func @transform_2(%arg0: i32) -> (i32, i32) {
    %c0_i32 = arith.constant 0 : i32
    %c0_i32_0 = arith.constant 0 : i32
    %c0_i32_1 = arith.constant 0 : i32
    return %c0_i32, %c0_i32_0 : i32, i32
  }
  func.func @transform_3(%arg0: i32) -> (i32, i32) {
    %c0_i32 = arith.constant 0 : i32
    %c0_i32_0 = arith.constant 0 : i32
    %c0_i32_1 = arith.constant 0 : i32
    return %c0_i32, %c0_i32_0 : i32, i32
  }
  func.func @transform_4(%arg0: i32) -> (i32, i32) {
    %c0_i32 = arith.constant 0 : i32
    %c0_i32_0 = arith.constant 0 : i32
    %c0_i32_1 = arith.constant 0 : i32
    return %c0_i32, %c0_i32_0 : i32, i32
  }
  func.func @transform_5(%arg0: i32) -> (i32, i32) {
    %c0_i32 = arith.constant 0 : i32
    %c0_i32_0 = arith.constant 0 : i32
    %c0_i32_1 = arith.constant 0 : i32
    return %c0_i32, %c0_i32_0 : i32, i32
  }
  func.func @transform_6(%arg0: i32) -> (i32, i32) {
    %c0_i32 = arith.constant 0 : i32
    %c0_i32_0 = arith.constant 0 : i32
    %c0_i32_1 = arith.constant 0 : i32
    return %c0_i32, %c0_i32_0 : i32, i32
  }
  func.func @transform_7(%arg0: i32) -> (i32, i32) {
    %c0_i32 = arith.constant 0 : i32
    %c0_i32_0 = arith.constant 0 : i32
    return %arg0, %c0_i32 : i32, i32
  }
}

</mosaic_0001>

<bundles_post_ra>
// kernel: tpu_custom_call.1
= control target key start
LH: loop header
LB: loop body
LE: loop exit
PB: predicated region body
PF: predicated region fallthrough
CT: control target
= control target key end

     0   :  { %12 = vsyncpa [#allocation3], 0  ;;  %s454_s0 = inlined_call_operand.vmem [shape: f32[32,16], index: 0, kind: input, shape index: {}]   ;;  %s455_s1 = inlined_call_operand.vmem [shape: bf16[16,64], index: 1, kind: input, shape index: {}]   ;;  %s456_s2 = inlined_call_operand.vmem [shape: f32[1,64], index: 2, kind: input, shape index: {}]   ;;  %s457_s3 = inlined_call_operand.vmem [shape: bf16[64,64], index: 3, kind: input, shape index: {}]   ;;  %s458_s4 = inlined_call_operand.vmem [shape: f32[1,64], index: 4, kind: input, shape index: {}]   ;;  %s459_s5 = inlined_call_operand.hbm [shape: bf16[64,128], index: 5, kind: input, shape index: {}]   ;;  %s460_s6 = inlined_call_operand.vmem [shape: f32[1,128], index: 6, kind: input, shape index: {}]   ;;  %s461_s7 = inlined_call_operand.hbm [shape: f32[32,128], index: 7, kind: output, shape index: {}]  }
   0x1   :  { %13 = vsyncpa [#allocation4], 0  ;;  %s28_s26 = sshll.u32 %s459_s5, 4  ;;  %s362_s27 = smov [#allocation2]   ;;  %s29_s26 = int_to_ptr.hbm [resolvable:$true] %s28_s26 }
   0x2   :  { %s30_s28 = sshll.u32 %s362_s27, 4  ;;  %s363_s29 = smov 64   ;;  %s31_s28 = int_to_ptr.vmem [resolvable:$true] %s30_s28 }
   0x3   :  { %s364_s30 = smov 4  }
   0x4   :  { %36 = dma.hbm_to_vmem [thread:$0]  %s29_s26, 512, %s31_s28, [#allocation3], %s363_s29, %s363_s29, %s364_s30  }
   0x5   :  { %358 = dma.done.wait [#allocation3], 512  }
   0x6   :  { %359 = vsyncadd [#allocation3], 4294966784  ;;  %v288_v0 = vld [vmem:[%s455_s1] sm:$0xff]  ;;  %v45_v2 = vld [vmem:[%s454_s0 + $0x8] sm:$0xff]  ;;  %vm62_vm0 = vcmask 130048   ;;  %vm130_vm1 = vcmask 523264  }
   0x7   :  { %v44_v1 = vld [vmem:[%s454_s0] sm:$0xff]  ;;  %76 = vmatpush.bf16.msra.mxu0 %v288_v0  ;;  %v46_v4 = vld [vmem:[%s454_s0 + $0x10] sm:$0xff]  ;;  %v47_v5 = vld [vmem:[%s454_s0 + $0x18] sm:$0xff]  ;;  %s233_s30 = sshll.u32 %s461_s7, 4  ;;  %s367_s8 = smov 8   ;;  %s234_s30 = int_to_ptr.hbm [resolvable:$true] %s233_s30 }
   0x8   :  { %v51_v3 = vpack.c.bf16 %v45_v2, %v44_v1  ;;  %v52_v6 = vpack.c.bf16 %v47_v5, %v46_v4  ;;  %v292_v7 = vld [vmem:[%s457_s3 + $0x18] sm:$0xff]  ;;  %v291_v8 = vld [vmem:[%s457_s3 + $0x10] sm:$0xff]  ;;  %v290_v9 = vld [vmem:[%s457_s3 + $0x8] sm:$0xff] }
   0x9   :  { %141 = vmatpush.bf16.msra.mxu1 %v292_v7  ;;  %297 = vmatpush.bf16.msra.mxu3 %v292_v7  ;;  %v289_v10 = vld [vmem:[%s457_s3] sm:$0xff]  ;;  %v296_v26 = vld [vmem:[#allocation2 + $0x18] sm:$0xff]  ;;  %v295_v27 = vld [vmem:[#allocation2 + $0x10] sm:$0xff] }
   0xa   :  { %250 = vmatmul.msk.bf16.vlgmr.msra.gmra.mxu0 %vm62_vm0, %v51_v3  ;;  %v307_v12 = vld [vmem:[%s456_s2] ss:$0 sm:$0xff]  ;;  %208 = vmatpush.bf16.msra.mxu2 %v296_v26  ;;  %v294_v28 = vld [vmem:[#allocation2 + $0x8] sm:$0xff] }
   0xb   :  { %v293_v29 = vld [vmem:[#allocation2] sm:$0xff] }
   0xc   :  { %v308_v31 = vld [vmem:[%s458_s4] ss:$0 sm:$0xff]  ;;  %s365_s4 = smov [#allocation5]  }
   0xd   :  { %142 = vmatpush.bf16.msra.mxu1 %v291_v8  ;;  %298 = vmatpush.bf16.msra.mxu3 %v291_v8  ;;  %v309_v45 = vld [vmem:[%s460_s6] ss:$0 sm:$0xff]  ;;  %s231_s27 = sshll.u32 %s365_s4, 4  ;;  %s366_s6 = smov 128   ;;  %s232_s27 = int_to_ptr.vmem [resolvable:$true] %s231_s27 }
   0xe   :  { %209 = vmatpush.bf16.msra.mxu2 %v295_v27 }
  0x11   :  { %143 = vmatpush.bf16.msra.mxu1 %v290_v9  ;;  %299 = vmatpush.bf16.msra.mxu3 %v290_v9 }
  0x12   :  { %210 = vmatpush.bf16.msra.mxu2 %v294_v28 }
  0x15   :  { %144 = vmatpush.bf16.msra.mxu1 %v289_v10  ;;  %300 = vmatpush.bf16.msra.mxu3 %v289_v10 }
  0x16   :  { %211 = vmatpush.bf16.msra.mxu2 %v293_v29 }
  0x1a   :  { %251 = vmatmul.msk.bf16.gmra.mxu0 %vm62_vm0, %v52_v6 }
  0x87   :  { %v78_v11 = vpop.f32.mrf.mxu0 }
  0x88   :  { %v79_v13 = vadd.f32 %v307_v12, %v78_v11 }
  0x8a   :  { %v88_v16 = vmax.f32 %v79_v13, 0.0 }
  0x8f   :  { %v80_v14 = vpop.f32.mrf.mxu0 }
  0x90   :  { %v81_v15 = vadd.f32 %v307_v12, %v80_v14 }
  0x92   :  { %v89_v17 = vmax.f32 %v81_v15, 0.0 }
  0x94   :  { %v101_v18 = vpack.c.bf16 %v89_v17, %v88_v16 }
  0x96   :  { %268 = vmatmul.msk.bf16.vlgmr.msra.gmra.mxu1 %vm130_vm1, %v101_v18 }
  0x97   :  { %v83_v19 = vpop.f32.mrf.mxu0 }
  0x98   :  { %v84_v20 = vadd.f32 %v307_v12, %v83_v19 }
  0x9a   :  { %v90_v23 = vmax.f32 %v84_v20, 0.0 }
  0x9f   :  { %v85_v21 = vpop.f32.mrf.mxu0 }
  0xa0   :  { %v86_v22 = vadd.f32 %v307_v12, %v85_v21 }
  0xa2   :  { %v91_v24 = vmax.f32 %v86_v22, 0.0 }
  0xa4   :  { %v102_v25 = vpack.c.bf16 %v91_v24, %v90_v23 }
  0xa6   :  { %269 = vmatmul.msk.bf16.vlgmr.msra.gmra.mxu3 %vm130_vm1, %v102_v25 }
 0x113   :  { %v146_v30 = vpop.f32.mrf.mxu1 }
 0x114   :  { %v147_v32 = vadd.f32 %v308_v31, %v146_v30 }
 0x116   :  { %v156_v35 = vmax.f32 %v147_v32, 0.0 }
 0x11b   :  { %v148_v33 = vpop.f32.mrf.mxu1 }
 0x11c   :  { %v149_v34 = vadd.f32 %v308_v31, %v148_v33 }
 0x11e   :  { %v157_v36 = vmax.f32 %v149_v34, 0.0 }
 0x120   :  { %v169_v37 = vpack.c.bf16 %v157_v36, %v156_v35 }
 0x122   :  { %286 = vmatmul.msk.bf16.vlgmr.msra.gmra.mxu2 %vm130_vm1, %v169_v37 }
 0x129   :  { %v151_v38 = vpop.f32.mrf.mxu3 }
 0x12a   :  { %v152_v39 = vadd.f32 %v308_v31, %v151_v38 }
 0x12c   :  { %v158_v42 = vmax.f32 %v152_v39, 0.0 }
 0x131   :  { %v153_v40 = vpop.f32.mrf.mxu3 }
 0x132   :  { %v154_v41 = vadd.f32 %v308_v31, %v153_v40 }
 0x134   :  { %v159_v43 = vmax.f32 %v154_v41, 0.0 }
 0x136   :  { %v170_v44 = vpack.c.bf16 %v159_v43, %v158_v42 }
 0x138   :  { %287 = vmatmul.msk.bf16.gmra.mxu2 %vm130_vm1, %v170_v44 }
 0x1a5   :  { %v213_v46 = vpop.f32.mrf.mxu2 }
 0x1a6   :  { %v214_v47 = vadd.f32 %v309_v45, %v213_v46 }
 0x1a8   :  { %223 = vst [vmem:[#allocation5] sm:$0xff] %v214_v47 }
 0x1ad   :  { %v215_v48 = vpop.f32.mrf.mxu2 }
 0x1ae   :  { %v216_v49 = vadd.f32 %v309_v45, %v215_v48 }
 0x1b0   :  { %224 = vst [vmem:[#allocation5 + $0x8] sm:$0xff] %v216_v49 }
 0x1bb   :  { %v218_v50 = vpop.f32.mrf.mxu2 }
 0x1bc   :  { %v219_v51 = vadd.f32 %v309_v45, %v218_v50 }
 0x1be   :  { %225 = vst [vmem:[#allocation5 + $0x10] sm:$0xff] %v219_v51 }
 0x1c3   :  { %v220_v52 = vpop.f32.mrf.mxu2 }
 0x1c4   :  { %v221_v53 = vadd.f32 %v309_v45, %v220_v52 }
 0x1c6   :  { %226 = vst [vmem:[#allocation5 + $0x18] sm:$0xff] %v221_v53 }
 0x1c7   :  { %239 = dma.vmem_to_hbm [thread:$0]  %s232_s27, 512, %s234_s30, [#allocation4], %s366_s6, %s366_s6, %s367_s8  }
 0x1c8   :  { %360 = dma.done.wait [#allocation4], 512  }
 0x1c9   :  { %361 = vsyncadd [#allocation4], 4294966784 }
 0x1ca   :  { %244 = vsyncpa [#allocation3], 1 }
 0x1cb   :  { %245 = vsyncpa [#allocation4], 1 }

// kernel: tpu_custom_call.1
= control target key start
LH: loop header
LB: loop body
LE: loop exit
PB: predicated region body
PF: predicated region fallthrough
CT: control target
= control target key end

     0   :  { %12 = vsyncpa [#allocation3], 0  ;;  %s454_s0 = inlined_call_operand.vmem [shape: f32[32,16], index: 0, kind: input, shape index: {}]   ;;  %s455_s1 = inlined_call_operand.vmem [shape: bf16[16,64], index: 1, kind: input, shape index: {}]   ;;  %s456_s2 = inlined_call_operand.vmem [shape: f32[1,64], index: 2, kind: input, shape index: {}]   ;;  %s457_s3 = inlined_call_operand.vmem [shape: bf16[64,64], index: 3, kind: input, shape index: {}]   ;;  %s458_s4 = inlined_call_operand.vmem [shape: f32[1,64], index: 4, kind: input, shape index: {}]   ;;  %s459_s5 = inlined_call_operand.hbm [shape: bf16[64,128], index: 5, kind: input, shape index: {}]   ;;  %s460_s6 = inlined_call_operand.vmem [shape: f32[1,128], index: 6, kind: input, shape index: {}]   ;;  %s461_s7 = inlined_call_operand.hbm [shape: f32[32,128], index: 7, kind: output, shape index: {}]  }
   0x1   :  { %13 = vsyncpa [#allocation4], 0  ;;  %s28_s26 = sshll.u32 %s459_s5, 4  ;;  %s362_s27 = smov [#allocation2]   ;;  %s29_s26 = int_to_ptr.hbm [resolvable:$true] %s28_s26 }
   0x2   :  { %s30_s28 = sshll.u32 %s362_s27, 4  ;;  %s363_s29 = smov 64   ;;  %s31_s28 = int_to_ptr.vmem [resolvable:$true] %s30_s28 }
   0x3   :  { %s364_s30 = smov 4  }
   0x4   :  { %36 = dma.hbm_to_vmem [thread:$0]  %s29_s26, 512, %s31_s28, [#allocation3], %s363_s29, %s363_s29, %s364_s30  }
   0x5   :  { %358 = dma.done.wait [#allocation3], 512  }
   0x6   :  { %359 = vsyncadd [#allocation3], 4294966784  ;;  %v288_v0 = vld [vmem:[%s455_s1] sm:$0xff]  ;;  %v45_v2 = vld [vmem:[%s454_s0 + $0x8] sm:$0xff]  ;;  %vm62_vm0 = vcmask 130048   ;;  %vm130_vm1 = vcmask 523264  }
   0x7   :  { %v44_v1 = vld [vmem:[%s454_s0] sm:$0xff]  ;;  %76 = vmatpush.bf16.msra.mxu0 %v288_v0  ;;  %v46_v4 = vld [vmem:[%s454_s0 + $0x10] sm:$0xff]  ;;  %v47_v5 = vld [vmem:[%s454_s0 + $0x18] sm:$0xff]  ;;  %s233_s30 = sshll.u32 %s461_s7, 4  ;;  %s367_s8 = smov 8   ;;  %s234_s30 = int_to_ptr.hbm [resolvable:$true] %s233_s30 }
   0x8   :  { %v51_v3 = vpack.c.bf16 %v45_v2, %v44_v1  ;;  %v52_v6 = vpack.c.bf16 %v47_v5, %v46_v4  ;;  %v292_v7 = vld [vmem:[%s457_s3 + $0x18] sm:$0xff]  ;;  %v291_v8 = vld [vmem:[%s457_s3 + $0x10] sm:$0xff]  ;;  %v290_v9 = vld [vmem:[%s457_s3 + $0x8] sm:$0xff] }
   0x9   :  { %141 = vmatpush.bf16.msra.mxu1 %v292_v7  ;;  %297 = vmatpush.bf16.msra.mxu3 %v292_v7  ;;  %v289_v10 = vld [vmem:[%s457_s3] sm:$0xff]  ;;  %v296_v26 = vld [vmem:[#allocation2 + $0x18] sm:$0xff]  ;;  %v295_v27 = vld [vmem:[#allocation2 + $0x10] sm:$0xff] }
   0xa   :  { %250 = vmatmul.msk.bf16.vlgmr.msra.gmra.mxu0 %vm62_vm0, %v51_v3  ;;  %v307_v12 = vld [vmem:[%s456_s2] ss:$0 sm:$0xff]  ;;  %208 = vmatpush.bf16.msra.mxu2 %v296_v26  ;;  %v294_v28 = vld [vmem:[#allocation2 + $0x8] sm:$0xff] }
   0xb   :  { %v293_v29 = vld [vmem:[#allocation2] sm:$0xff] }
   0xc   :  { %v308_v31 = vld [vmem:[%s458_s4] ss:$0 sm:$0xff]  ;;  %s365_s4 = smov [#allocation5]  }
   0xd   :  { %142 = vmatpush.bf16.msra.mxu1 %v291_v8  ;;  %298 = vmatpush.bf16.msra.mxu3 %v291_v8  ;;  %v309_v45 = vld [vmem:[%s460_s6] ss:$0 sm:$0xff]  ;;  %s231_s27 = sshll.u32 %s365_s4, 4  ;;  %s366_s6 = smov 128   ;;  %s232_s27 = int_to_ptr.vmem [resolvable:$true] %s231_s27 }
   0xe   :  { %209 = vmatpush.bf16.msra.mxu2 %v295_v27 }
  0x11   :  { %143 = vmatpush.bf16.msra.mxu1 %v290_v9  ;;  %299 = vmatpush.bf16.msra.mxu3 %v290_v9 }
  0x12   :  { %210 = vmatpush.bf16.msra.mxu2 %v294_v28 }
  0x15   :  { %144 = vmatpush.bf16.msra.mxu1 %v289_v10  ;;  %300 = vmatpush.bf16.msra.mxu3 %v289_v10 }
  0x16   :  { %211 = vmatpush.bf16.msra.mxu2 %v293_v29 }
  0x1a   :  { %251 = vmatmul.msk.bf16.gmra.mxu0 %vm62_vm0, %v52_v6 }
  0x87   :  { %v78_v11 = vpop.f32.mrf.mxu0 }
  0x88   :  { %v79_v13 = vadd.f32 %v307_v12, %v78_v11 }
  0x8a   :  { %v88_v16 = vmax.f32 %v79_v13, 0.0 }
  0x8f   :  { %v80_v14 = vpop.f32.mrf.mxu0 }
  0x90   :  { %v81_v15 = vadd.f32 %v307_v12, %v80_v14 }
  0x92   :  { %v89_v17 = vmax.f32 %v81_v15, 0.0 }
  0x94   :  { %v101_v18 = vpack.c.bf16 %v89_v17, %v88_v16 }
  0x96   :  { %268 = vmatmul.msk.bf16.vlgmr.msra.gmra.mxu1 %vm130_vm1, %v101_v18 }
  0x97   :  { %v83_v19 = vpop.f32.mrf.mxu0 }
  0x98   :  { %v84_v20 = vadd.f32 %v307_v12, %v83_v19 }
  0x9a   :  { %v90_v23 = vmax.f32 %v84_v20, 0.0 }
  0x9f   :  { %v85_v21 = vpop.f32.mrf.mxu0 }
  0xa0   :  { %v86_v22 = vadd.f32 %v307_v12, %v85_v21 }
  0xa2   :  { %v91_v24 = vmax.f32 %v86_v22, 0.0 }
  0xa4   :  { %v102_v25 = vpack.c.bf16 %v91_v24, %v90_v23 }
  0xa6   :  { %269 = vmatmul.msk.bf16.vlgmr.msra.gmra.mxu3 %vm130_vm1, %v102_v25 }
 0x113   :  { %v146_v30 = vpop.f32.mrf.mxu1 }
 0x114   :  { %v147_v32 = vadd.f32 %v308_v31, %v146_v30 }
 0x116   :  { %v156_v35 = vmax.f32 %v147_v32, 0.0 }
 0x11b   :  { %v148_v33 = vpop.f32.mrf.mxu1 }
 0x11c   :  { %v149_v34 = vadd.f32 %v308_v31, %v148_v33 }
 0x11e   :  { %v157_v36 = vmax.f32 %v149_v34, 0.0 }
 0x120   :  { %v169_v37 = vpack.c.bf16 %v157_v36, %v156_v35 }
 0x122   :  { %286 = vmatmul.msk.bf16.vlgmr.msra.gmra.mxu2 %vm130_vm1, %v169_v37 }
 0x129   :  { %v151_v38 = vpop.f32.mrf.mxu3 }
 0x12a   :  { %v152_v39 = vadd.f32 %v308_v31, %v151_v38 }
 0x12c   :  { %v158_v42 = vmax.f32 %v152_v39, 0.0 }
 0x131   :  { %v153_v40 = vpop.f32.mrf.mxu3 }
 0x132   :  { %v154_v41 = vadd.f32 %v308_v31, %v153_v40 }
 0x134   :  { %v159_v43 = vmax.f32 %v154_v41, 0.0 }
 0x136   :  { %v170_v44 = vpack.c.bf16 %v159_v43, %v158_v42 }
 0x138   :  { %287 = vmatmul.msk.bf16.gmra.mxu2 %vm130_vm1, %v170_v44 }
 0x1a5   :  { %v213_v46 = vpop.f32.mrf.mxu2 }
 0x1a6   :  { %v214_v47 = vadd.f32 %v309_v45, %v213_v46 }
 0x1a8   :  { %223 = vst [vmem:[#allocation5] sm:$0xff] %v214_v47 }
 0x1ad   :  { %v215_v48 = vpop.f32.mrf.mxu2 }
 0x1ae   :  { %v216_v49 = vadd.f32 %v309_v45, %v215_v48 }
 0x1b0   :  { %224 = vst [vmem:[#allocation5 + $0x8] sm:$0xff] %v216_v49 }
 0x1bb   :  { %v218_v50 = vpop.f32.mrf.mxu2 }
 0x1bc   :  { %v219_v51 = vadd.f32 %v309_v45, %v218_v50 }
 0x1be   :  { %225 = vst [vmem:[#allocation5 + $0x10] sm:$0xff] %v219_v51 }
 0x1c3   :  { %v220_v52 = vpop.f32.mrf.mxu2 }
 0x1c4   :  { %v221_v53 = vadd.f32 %v309_v45, %v220_v52 }
 0x1c6   :  { %226 = vst [vmem:[#allocation5 + $0x18] sm:$0xff] %v221_v53 }
 0x1c7   :  { %239 = dma.vmem_to_hbm [thread:$0]  %s232_s27, 512, %s234_s30, [#allocation4], %s366_s6, %s366_s6, %s367_s8  }
 0x1c8   :  { %360 = dma.done.wait [#allocation4], 512  }
 0x1c9   :  { %361 = vsyncadd [#allocation4], 4294966784 }
 0x1ca   :  { %244 = vsyncpa [#allocation3], 1 }
 0x1cb   :  { %245 = vsyncpa [#allocation4], 1 }

</bundles_post_ra>
